<compile_context>
chip_gen: v7x
topology: tpu7x:2x2x1
jax: 0.10.0
libtpu: 0.0.40
codegen_flags: <defaults>
</compile_context>

<pallas_src>
import functools

import jax
import jax.numpy as jnp
import numpy as np
from jax.experimental import pallas as pl
from jax.experimental.pallas import tpu as pltpu


# ---------------------------------------------------------------------------
# Fused kernel: 3x3 conv (SAME) + bias + ReLU + global avg pool + FC (logits)
# One grid step per batch element.
# ---------------------------------------------------------------------------
def _fused_conv_pool_fc_kernel(x_ref, w_ref, b_ref, fcw_ref, fcb_ref, m_ref,
                               o_ref, patches_ref, *, H, W, Cin, Cout, NC):
    # x_ref:       (Cin, H*W)    f32   channels on sublanes, spatial on lanes
    # w_ref:       (Cout, 9*Cin) bf16  conv weights, cols ordered (kh, kw, cin)
    # b_ref:       (Cout, 1)     f32   conv bias
    # fcw_ref:     (Cout, NC)    f32   classifier weight
    # fcb_ref:     (1, NC)       f32   classifier bias
    # m_ref:       (9, H*W)      f32   0/1 border-validity mask per conv tap
    # o_ref:       (1, NC)       f32   logits for this batch element
    # patches_ref: (9*Cin, H*W)  f32   VMEM scratch (lane-dense im2col)
    HW = H * W
    x = x_ref[...]                                          # (Cin, HW)

    # Build the im2col matrix: one lane-rolled + border-masked copy per tap.
    for kh in range(3):
        for kw in range(3):
            k = kh * 3 + kw
            s = (kh - 1) * W + (kw - 1)                     # flattened shift
            shifted = x if s == 0 else pltpu.roll(x, (-s) % HW, 1)
            slab = shifted * m_ref[k:k + 1, :]              # zero out-of-border
            patches_ref[k * Cin:(k + 1) * Cin, :] = slab

    # Single MXU push, lane-dense output: (Cout, 9Cin) @ (9Cin, HW) -> (Cout, HW)
    conv = jnp.dot(w_ref[...], patches_ref[...].astype(jnp.bfloat16),
                   preferred_element_type=jnp.float32)
    conv = jnp.maximum(conv + b_ref[...], 0.0)              # bias + ReLU (f32)

    # Global average pool = scaled lane-sum (XLU reduce + one VPU multiply).
    pooled = jnp.sum(conv, axis=1, keepdims=True) * (1.0 / HW)   # (Cout, 1)

    # Tiny classifier epilogue (kept in f32): broadcast-mul + sublane reduce.
    logits = jnp.sum(pooled * fcw_ref[...], axis=0, keepdims=True) + fcb_ref[...]
    o_ref[...] = logits                                     # (1, NC)


# ---------------------------------------------------------------------------
# NAS2normal forward: net(x) -> (features, results); return results (logits)
# ---------------------------------------------------------------------------
def nas2normal_forward(x_nchw, params):
    N, Cin, H, W = x_nchw.shape
    HW = H * W
    Cout = params["conv_w_oihw"].shape[0]
    NC = params["fc_w"].shape[1]

    # One-time parameter plumbing (tiny tensors, not activation traffic):
    # OIHW -> (Cout, 9*Cin) with columns ordered (kh, kw, cin); bf16 MXU operand.
    w_col = jnp.transpose(params["conv_w_oihw"], (0, 2, 3, 1))
    w_col = w_col.reshape(Cout, 9 * Cin).astype(jnp.bfloat16)
    b_col = params["conv_b"].reshape(Cout, 1).astype(jnp.float32)
    fcw = params["fc_w"].astype(jnp.float32)
    fcb = params["fc_b"].reshape(1, NC).astype(jnp.float32)

    # Border-validity masks for the 9 taps: pure shape math, built with numpy
    # (constant under jit, never touches the activation path).
    r = np.arange(H)[:, None]
    c = np.arange(W)[None, :]
    masks = []
    for kh in range(3):
        for kw in range(3):
            dh, dw = kh - 1, kw - 1
            m = (r + dh >= 0) & (r + dh < H) & (c + dw >= 0) & (c + dw < W)
            masks.append(m.reshape(HW))
    mask9 = jnp.asarray(np.stack(masks, 0).astype(np.float32))      # (9, HW)

    # Activations stay NCHW; only a free contiguous reshape (no pad/transpose).
    x_flat = x_nchw.reshape(N, Cin, HW).astype(jnp.float32)

    kernel = functools.partial(_fused_conv_pool_fc_kernel,
                               H=H, W=W, Cin=Cin, Cout=Cout, NC=NC)

    conv_flops = 2 * N * HW * (9 * Cin) * Cout
    fc_flops = 2 * N * Cout * NC
    bytes_accessed = (x_flat.size * 4 + w_col.size * 2 + b_col.size * 4 +
                      fcw.size * 4 + fcb.size * 4 + mask9.size * 4 + N * NC * 4)

    out = pl.pallas_call(
        kernel,
        out_shape=jax.ShapeDtypeStruct((N, 1, NC), jnp.float32),
        grid_spec=pltpu.PrefetchScalarGridSpec(
            num_scalar_prefetch=0,
            grid=(N,),
            in_specs=[
                pl.BlockSpec((pl.Squeezed(), Cin, HW), lambda n: (n, 0, 0)),
                pl.BlockSpec((Cout, 9 * Cin), lambda n: (0, 0)),
                pl.BlockSpec((Cout, 1), lambda n: (0, 0)),
                pl.BlockSpec((Cout, NC), lambda n: (0, 0)),
                pl.BlockSpec((1, NC), lambda n: (0, 0)),
                pl.BlockSpec((9, HW), lambda n: (0, 0)),
            ],
            out_specs=pl.BlockSpec((pl.Squeezed(), 1, NC), lambda n: (n, 0, 0)),
            scratch_shapes=[pltpu.VMEM((9 * Cin, HW), jnp.float32)],
        ),
        compiler_params=pltpu.CompilerParams(
            dimension_semantics=("parallel",),          # shard batch on v7x 2xTC
            vmem_limit_bytes=16 * 1024 * 1024,          # tiles use only ~100 KiB
        ),
        cost_estimate=pl.CostEstimate(
            flops=conv_flops + fc_flops,
            transcendentals=0,
            bytes_accessed=bytes_accessed),
    )(x_flat, w_col, b_col, fcw, fcb, mask9)

    return out[:, 0, :]   # NAS2normal.forward returns the 2nd element of net(x)


# ---------------------------------------------------------------------------
# Pure-JAX f32 reference (for correctness check)
# ---------------------------------------------------------------------------
def reference_forward(x_nchw, params):
    out = jax.lax.conv_general_dilated(
        x_nchw, params["conv_w_oihw"], window_strides=(1, 1), padding="SAME",
        dimension_numbers=("NCHW", "OIHW", "NCHW"),
        precision=jax.lax.Precision.HIGHEST)
    out = out + params["conv_b"].reshape(1, -1, 1, 1)
    out = jnp.maximum(out, 0.0)
    pooled = jnp.mean(out, axis=(2, 3))                      # (N, C)
    return jnp.dot(pooled, params["fc_w"],
                   precision=jax.lax.Precision.HIGHEST) + params["fc_b"]


if __name__ == "__main__":
    key = jax.random.PRNGKey(0)
    N, Cin, H, W = 2, 4, 16, 16
    Cout, num_classes = 32, 10

    k_x, k_w, k_b, k_fw, k_fb = jax.random.split(key, 5)
    x = jax.random.normal(k_x, (N, Cin, H, W), dtype=jnp.float32)

    params = {
        "conv_w_oihw": 0.1 * jax.random.normal(k_w, (Cout, Cin, 3, 3), jnp.float32),
        "conv_b": 0.1 * jax.random.normal(k_b, (Cout,), jnp.float32),
        "fc_w": 0.1 * jax.random.normal(k_fw, (Cout, num_classes), jnp.float32),
        "fc_b": 0.1 * jax.random.normal(k_fb, (num_classes,), jnp.float32),
    }

    fwd = jax.jit(nas2normal_forward)
    results = jax.block_until_ready(fwd(x, params))
    ref = jax.block_until_ready(reference_forward(x, params))

    # bf16 MXU operands with f32 accumulation -> compare against the f32
    # reference with a correspondingly loosened tolerance.
    np.testing.assert_allclose(np.asarray(results), np.asarray(ref),
                               rtol=2e-2, atol=5e-3)
    assert results.shape == (N, num_classes)
    print("KERNEL_OK")
</pallas_src>

<mosaic_0001>
module attributes {stable_mosaic.version = 11 : i64} {
  func.func @_fused_conv_pool_fc_kernel(%arg0: i32, %arg1: memref<1x4x256xf32, #tpu.memory_space<vmem>>, %arg2: memref<32x36xbf16, #tpu.memory_space<vmem>>, %arg3: memref<32x1xf32, #tpu.memory_space<vmem>>, %arg4: memref<32x10xf32, #tpu.memory_space<vmem>>, %arg5: memref<1x10xf32, #tpu.memory_space<vmem>>, %arg6: memref<9x256xf32, #tpu.memory_space<vmem>>, %arg7: memref<1x1x10xf32, #tpu.memory_space<vmem>>, %arg8: memref<36x256xf32, #tpu.memory_space<vmem>>) attributes {dimension_semantics = [#tpu.dimension_semantics<parallel>], iteration_bounds = array<i64: 2>, scalar_prefetch = 0 : i64, scratch_operands = 1 : i64, tpu.core_type = #tpu.core_type<tc>, window_params = [{transform_indices = @transform_0, window_bounds = array<i64: 1, 4, 256>}, {pipeline_mode = #tpu.pipeline_mode<synchronous>, transform_indices = @transform_1, window_bounds = array<i64: 32, 36>}, {pipeline_mode = #tpu.pipeline_mode<synchronous>, transform_indices = @transform_2, window_bounds = array<i64: 32, 1>}, {pipeline_mode = #tpu.pipeline_mode<synchronous>, transform_indices = @transform_3, window_bounds = array<i64: 32, 10>}, {pipeline_mode = #tpu.pipeline_mode<synchronous>, transform_indices = @transform_4, window_bounds = array<i64: 1, 10>}, {pipeline_mode = #tpu.pipeline_mode<synchronous>, transform_indices = @transform_5, window_bounds = array<i64: 9, 256>}, {transform_indices = @transform_6, window_bounds = array<i64: 1, 1, 10>}]} {
    %c0 = arith.constant 0 : index
    %c0_0 = arith.constant 0 : index
    %c0_1 = arith.constant 0 : index
    %0 = vector.load %arg1[%c0, %c0_0, %c0_1] : memref<1x4x256xf32, #tpu.memory_space<vmem>>, vector<1x4x256xf32>
    %1 = vector.shape_cast %0 : vector<1x4x256xf32> to vector<4x256xf32>
    %c17_i32 = arith.constant 17 : i32
    %2 = tpu.dynamic_rotate %1 by %c17_i32 dim 1 : vector<4x256xf32>, i32 -> vector<4x256xf32>
    %c0_2 = arith.constant 0 : index
    %c0_3 = arith.constant 0 : index
    %3 = vector.load %arg6[%c0_2, %c0_3] : memref<9x256xf32, #tpu.memory_space<vmem>>, vector<1x256xf32>
    %4 = vector.broadcast %3 : vector<1x256xf32> to vector<4x256xf32>
    %5 = arith.mulf %2, %4 : vector<4x256xf32>
    %c0_4 = arith.constant 0 : index
    %c0_5 = arith.constant 0 : index
    %6 = vector.load %arg8[%c0_4, %c0_5] : memref<36x256xf32, #tpu.memory_space<vmem>>, vector<4x256xf32>
    tpu.vector_store %arg8[%c0_4, %c0_5], %5 {strides = array<i32>} : memref<36x256xf32, #tpu.memory_space<vmem>>, vector<4x256xf32>,
    %c16_i32 = arith.constant 16 : i32
    %7 = tpu.dynamic_rotate %1 by %c16_i32 dim 1 : vector<4x256xf32>, i32 -> vector<4x256xf32>
    %c1 = arith.constant 1 : index
    %c0_6 = arith.constant 0 : index
    %8 = vector.load %arg6[%c1, %c0_6] : memref<9x256xf32, #tpu.memory_space<vmem>>, vector<1x256xf32>
    %9 = vector.broadcast %8 : vector<1x256xf32> to vector<4x256xf32>
    %10 = arith.mulf %7, %9 : vector<4x256xf32>
    %c4 = arith.constant 4 : index
    %c0_7 = arith.constant 0 : index
    %11 = vector.load %arg8[%c4, %c0_7] : memref<36x256xf32, #tpu.memory_space<vmem>>, vector<4x256xf32>
    tpu.vector_store %arg8[%c4, %c0_7], %10 {strides = array<i32>} : memref<36x256xf32, #tpu.memory_space<vmem>>, vector<4x256xf32>,
    %c15_i32 = arith.constant 15 : i32
    %12 = tpu.dynamic_rotate %1 by %c15_i32 dim 1 : vector<4x256xf32>, i32 -> vector<4x256xf32>
    %c2 = arith.constant 2 : index
    %c0_8 = arith.constant 0 : index
    %13 = vector.load %arg6[%c2, %c0_8] : memref<9x256xf32, #tpu.memory_space<vmem>>, vector<1x256xf32>
    %14 = vector.broadcast %13 : vector<1x256xf32> to vector<4x256xf32>
    %15 = arith.mulf %12, %14 : vector<4x256xf32>
    %c8 = arith.constant 8 : index
    %c0_9 = arith.constant 0 : index
    %16 = vector.load %arg8[%c8, %c0_9] : memref<36x256xf32, #tpu.memory_space<vmem>>, vector<4x256xf32>
    tpu.vector_store %arg8[%c8, %c0_9], %15 {strides = array<i32>} : memref<36x256xf32, #tpu.memory_space<vmem>>, vector<4x256xf32>,
    %c1_i32 = arith.constant 1 : i32
    %17 = tpu.dynamic_rotate %1 by %c1_i32 dim 1 : vector<4x256xf32>, i32 -> vector<4x256xf32>
    %c3 = arith.constant 3 : index
    %c0_10 = arith.constant 0 : index
    %18 = vector.load %arg6[%c3, %c0_10] : memref<9x256xf32, #tpu.memory_space<vmem>>, vector<1x256xf32>
    %19 = vector.broadcast %18 : vector<1x256xf32> to vector<4x256xf32>
    %20 = arith.mulf %17, %19 : vector<4x256xf32>
    %c12 = arith.constant 12 : index
    %c0_11 = arith.constant 0 : index
    %21 = vector.load %arg8[%c12, %c0_11] : memref<36x256xf32, #tpu.memory_space<vmem>>, vector<4x256xf32>
    tpu.vector_store %arg8[%c12, %c0_11], %20 {strides = array<i32>} : memref<36x256xf32, #tpu.memory_space<vmem>>, vector<4x256xf32>,
    %c4_12 = arith.constant 4 : index
    %c0_13 = arith.constant 0 : index
    %22 = vector.load %arg6[%c4_12, %c0_13] : memref<9x256xf32, #tpu.memory_space<vmem>>, vector<1x256xf32>
    %23 = vector.broadcast %22 : vector<1x256xf32> to vector<4x256xf32>
    %24 = arith.mulf %1, %23 : vector<4x256xf32>
    %c16 = arith.constant 16 : index
    %c0_14 = arith.constant 0 : index
    %25 = vector.load %arg8[%c16, %c0_14] : memref<36x256xf32, #tpu.memory_space<vmem>>, vector<4x256xf32>
    tpu.vector_store %arg8[%c16, %c0_14], %24 {strides = array<i32>} : memref<36x256xf32, #tpu.memory_space<vmem>>, vector<4x256xf32>,
    %c255_i32 = arith.constant 255 : i32
    %26 = tpu.dynamic_rotate %1 by %c255_i32 dim 1 : vector<4x256xf32>, i32 -> vector<4x256xf32>
    %c5 = arith.constant 5 : index
    %c0_15 = arith.constant 0 : index
    %27 = vector.load %arg6[%c5, %c0_15] : memref<9x256xf32, #tpu.memory_space<vmem>>, vector<1x256xf32>
    %28 = vector.broadcast %27 : vector<1x256xf32> to vector<4x256xf32>
    %29 = arith.mulf %26, %28 : vector<4x256xf32>
    %c20 = arith.constant 20 : index
    %c0_16 = arith.constant 0 : index
    %30 = vector.load %arg8[%c20, %c0_16] : memref<36x256xf32, #tpu.memory_space<vmem>>, vector<4x256xf32>
    tpu.vector_store %arg8[%c20, %c0_16], %29 {strides = array<i32>} : memref<36x256xf32, #tpu.memory_space<vmem>>, vector<4x256xf32>,
    %c241_i32 = arith.constant 241 : i32
    %31 = tpu.dynamic_rotate %1 by %c241_i32 dim 1 : vector<4x256xf32>, i32 -> vector<4x256xf32>
    %c6 = arith.constant 6 : index
    %c0_17 = arith.constant 0 : index
    %32 = vector.load %arg6[%c6, %c0_17] : memref<9x256xf32, #tpu.memory_space<vmem>>, vector<1x256xf32>
    %33 = vector.broadcast %32 : vector<1x256xf32> to vector<4x256xf32>
    %34 = arith.mulf %31, %33 : vector<4x256xf32>
    %c24 = arith.constant 24 : index
    %c0_18 = arith.constant 0 : index
    %35 = vector.load %arg8[%c24, %c0_18] : memref<36x256xf32, #tpu.memory_space<vmem>>, vector<4x256xf32>
    tpu.vector_store %arg8[%c24, %c0_18], %34 {strides = array<i32>} : memref<36x256xf32, #tpu.memory_space<vmem>>, vector<4x256xf32>,
    %c240_i32 = arith.constant 240 : i32
    %36 = tpu.dynamic_rotate %1 by %c240_i32 dim 1 : vector<4x256xf32>, i32 -> vector<4x256xf32>
    %c7 = arith.constant 7 : index
    %c0_19 = arith.constant 0 : index
    %37 = vector.load %arg6[%c7, %c0_19] : memref<9x256xf32, #tpu.memory_space<vmem>>, vector<1x256xf32>
    %38 = vector.broadcast %37 : vector<1x256xf32> to vector<4x256xf32>
    %39 = arith.mulf %36, %38 : vector<4x256xf32>
    %c28 = arith.constant 28 : index
    %c0_20 = arith.constant 0 : index
    %40 = vector.load %arg8[%c28, %c0_20] : memref<36x256xf32, #tpu.memory_space<vmem>>, vector<4x256xf32>
    tpu.vector_store %arg8[%c28, %c0_20], %39 {strides = array<i32>} : memref<36x256xf32, #tpu.memory_space<vmem>>, vector<4x256xf32>,
    %c239_i32 = arith.constant 239 : i32
    %41 = tpu.dynamic_rotate %1 by %c239_i32 dim 1 : vector<4x256xf32>, i32 -> vector<4x256xf32>
    %c8_21 = arith.constant 8 : index
    %c0_22 = arith.constant 0 : index
    %42 = vector.load %arg6[%c8_21, %c0_22] : memref<9x256xf32, #tpu.memory_space<vmem>>, vector<1x256xf32>
    %43 = vector.broadcast %42 : vector<1x256xf32> to vector<4x256xf32>
    %44 = arith.mulf %41, %43 : vector<4x256xf32>
    %c32 = arith.constant 32 : index
    %c0_23 = arith.constant 0 : index
    %45 = vector.load %arg8[%c32, %c0_23] : memref<36x256xf32, #tpu.memory_space<vmem>>, vector<4x256xf32>
    tpu.vector_store %arg8[%c32, %c0_23], %44 {strides = array<i32>} : memref<36x256xf32, #tpu.memory_space<vmem>>, vector<4x256xf32>,
    %c0_24 = arith.constant 0 : index
    %c0_25 = arith.constant 0 : index
    %46 = vector.load %arg2[%c0_24, %c0_25] : memref<32x36xbf16, #tpu.memory_space<vmem>>, vector<32x36xbf16>
    %c0_26 = arith.constant 0 : index
    %c0_27 = arith.constant 0 : index
    %47 = vector.load %arg8[%c0_26, %c0_27] : memref<36x256xf32, #tpu.memory_space<vmem>>, vector<36x256xf32>
    %48 = arith.truncf %47 : vector<36x256xf32> to vector<36x256xbf16>
    %cst = arith.constant dense<0.000000e+00> : vector<32x256xf32>
    %49 = tpu.matmul %46, %48, %cst {dimension_numbers = #tpu.dot_dimension_numbers<[1], [0], [0], [1], [0, 0, 1, 1], [], []>} : vector<32x36xbf16>, vector<36x256xbf16>, vector<32x256xf32> -> vector<32x256xf32>
    %c0_28 = arith.constant 0 : index
    %c0_29 = arith.constant 0 : index
    %50 = vector.load %arg3[%c0_28, %c0_29] : memref<32x1xf32, #tpu.memory_space<vmem>>, vector<32x1xf32>
    %51 = vector.broadcast %50 : vector<32x1xf32> to vector<32x256xf32>
    %52 = arith.addf %49, %51 : vector<32x256xf32>
    %cst_30 = arith.constant 0.000000e+00 : f32
    %53 = vector.broadcast %cst_30 : f32 to vector<32x256xf32>
    %54 = arith.maximumf %52, %53 : vector<32x256xf32>
    %cst_31 = arith.constant dense<0.000000e+00> : vector<32xf32>
    %55 = vector.multi_reduction <add>, %54, %cst_31 [1] : vector<32x256xf32> to vector<32xf32>
    %56 = vector.shape_cast %55 : vector<32xf32> to vector<32x1xf32>
    %cst_32 = arith.constant 3.906250e-03 : f32
    %57 = vector.broadcast %cst_32 : f32 to vector<32x1xf32>
    %58 = arith.mulf %56, %57 : vector<32x1xf32>
    %c0_33 = arith.constant 0 : index
    %c0_34 = arith.constant 0 : index
    %59 = vector.load %arg4[%c0_33, %c0_34] : memref<32x10xf32, #tpu.memory_space<vmem>>, vector<32x10xf32>
    %60 = vector.broadcast %58 : vector<32x1xf32> to vector<32x10xf32>
    %61 = arith.mulf %60, %59 : vector<32x10xf32>
    %cst_35 = arith.constant dense<0.000000e+00> : vector<10xf32>
    %62 = vector.multi_reduction <add>, %61, %cst_35 [0] : vector<32x10xf32> to vector<10xf32>
    %63 = vector.shape_cast %62 : vector<10xf32> to vector<1x10xf32>
    %c0_36 = arith.constant 0 : index
    %c0_37 = arith.constant 0 : index
    %64 = vector.load %arg5[%c0_36, %c0_37] : memref<1x10xf32, #tpu.memory_space<vmem>>, vector<1x10xf32>
    %65 = arith.addf %63, %64 : vector<1x10xf32>
    %c0_38 = arith.constant 0 : index
    %c0_39 = arith.constant 0 : index
    %c0_40 = arith.constant 0 : index
    %66 = vector.load %arg7[%c0_38, %c0_39, %c0_40] : memref<1x1x10xf32, #tpu.memory_space<vmem>>, vector<1x1x10xf32>
    %67 = vector.shape_cast %66 : vector<1x1x10xf32> to vector<1x10xf32>
    %68 = vector.shape_cast %65 : vector<1x10xf32> to vector<1x1x10xf32>
    tpu.vector_store %arg7[%c0_38, %c0_39, %c0_40], %68 {strides = array<i32>} : memref<1x1x10xf32, #tpu.memory_space<vmem>>, vector<1x1x10xf32>,
    return
  }
  func.func @transform_0(%arg0: i32) -> (i32, i32, i32) {
    %c0_i32 = arith.constant 0 : i32
    %c0_i32_0 = arith.constant 0 : i32
    %c0_i32_1 = arith.constant 0 : i32
    return %arg0, %c0_i32, %c0_i32_0 : i32, i32, i32
  }
  func.func @transform_1(%arg0: i32) -> (i32, i32) {
    %c0_i32 = arith.constant 0 : i32
    %c0_i32_0 = arith.constant 0 : i32
    %c0_i32_1 = arith.constant 0 : i32
    return %c0_i32, %c0_i32_0 : i32, i32
  }
  func.func @transform_2(%arg0: i32) -> (i32, i32) {
    %c0_i32 = arith.constant 0 : i32
    %c0_i32_0 = arith.constant 0 : i32
    %c0_i32_1 = arith.constant 0 : i32
    return %c0_i32, %c0_i32_0 : i32, i32
  }
  func.func @transform_3(%arg0: i32) -> (i32, i32) {
    %c0_i32 = arith.constant 0 : i32
    %c0_i32_0 = arith.constant 0 : i32
    %c0_i32_1 = arith.constant 0 : i32
    return %c0_i32, %c0_i32_0 : i32, i32
  }
  func.func @transform_4(%arg0: i32) -> (i32, i32) {
    %c0_i32 = arith.constant 0 : i32
    %c0_i32_0 = arith.constant 0 : i32
    %c0_i32_1 = arith.constant 0 : i32
    return %c0_i32, %c0_i32_0 : i32, i32
  }
  func.func @transform_5(%arg0: i32) -> (i32, i32) {
    %c0_i32 = arith.constant 0 : i32
    %c0_i32_0 = arith.constant 0 : i32
    %c0_i32_1 = arith.constant 0 : i32
    return %c0_i32, %c0_i32_0 : i32, i32
  }
  func.func @transform_6(%arg0: i32) -> (i32, i32, i32) {
    %c0_i32 = arith.constant 0 : i32
    %c0_i32_0 = arith.constant 0 : i32
    %c0_i32_1 = arith.constant 0 : i32
    return %arg0, %c0_i32, %c0_i32_0 : i32, i32, i32
  }
}

</mosaic_0001>

<bundles_post_ra>
// kernel: nas2normal_forward.1
= control target key start
LH: loop header
LB: loop body
LE: loop exit
PB: predicated region body
PF: predicated region fallthrough
CT: control target
= control target key end

     0   :  { %11 = vsyncpa [#allocation4], 0  ;;  %s1128_s0 = inlined_call_operand.vmem [shape: f32[2,4,256], index: 0, kind: input, shape index: {}]   ;;  %s1129_s1 = inlined_call_operand.vmem [shape: bf16[32,36], index: 1, kind: input, shape index: {}]   ;;  %s1130_s2 = inlined_call_operand.vmem [shape: f32[32,1], index: 2, kind: input, shape index: {}]   ;;  %s1131_s3 = inlined_call_operand.vmem [shape: f32[32,10], index: 3, kind: input, shape index: {}]   ;;  %s1132_s4 = inlined_call_operand.vmem [shape: f32[1,10], index: 4, kind: input, shape index: {}]   ;;  %s1133_s5 = inlined_call_operand.vmem [shape: f32[9,256], index: 5, kind: input, shape index: {}]   ;;  %s1134_s6 = inlined_call_operand.hbm [shape: f32[2,1,10], index: 6, kind: output, shape index: {}]  }
   0x1   :  { %13 = vsyncpa [#allocation4 + $0x1], 0  ;;  %s920_s21 = smov 0   ;;  %s922_s22 = smov 0  }
   0x2   :  { %s924_s23 = smov 0   ;;  %s926_s24 = smov 0  }
   0x3 LB: > { %s941_s25 = sadd.s32 4294967295, %s873_s24   ;;  %s729_s26 = sadd.s32 4294967294, %s873_s24   ;;  %s873_s24 = sphi %s926_s24, %s1140_s24   ;;  %s869_s23 = sphi %s924_s23, %s1139_s23   ;;  %s865_s22 = sphi %s922_s22, %s1138_s22   ;;  %s861_s21 = sphi %s920_s21, %s1137_s21  }
   0x4   : > { %s945_s27 = sadd.s32 1, %s873_s24   ;;  %s157_s28 = sadd.s32 1, %s869_s23 }
   0x5   : > { %s154_s29 = ssub.s32 %s873_s24, %s945_s27  ;;  %p167_p0 = scmp.ne.s32.totalorder %s869_s23, %s865_s22 }
   0x6   : > { %p155_p1 = scmp.eq.s32.totalorder %s154_s29, 0  ;;  %p168_p2 = scmp.eq.s32.totalorder %s941_s25, 1 }
   0x7   : > { %p173_p3 = scmp.ne.s32.totalorder %s865_s22, %s861_s21  ;;  %p174_p4 = scmp.eq.s32.totalorder %s729_s26, 1 }
   0x8   : > { %s956_s30 = scalar_select %p155_p1, %s869_s23, %s157_s28  }
   0x9   : > { %p958_p5 = por %p168_p2, %p167_p0  ;;  %p962_p6 = por %p174_p4, %p173_p3 }
   0xa   : > { %p732_p7 = scmp.ge.s32.totalorder %s873_s24, 1  ;;  %p215_p8 = scmp.lt.s32.totalorder %s873_s24, 3 }
   0xc   : > { %p216_p9 = pnand %p732_p7, %p215_p8 }
   0xd   : > { %p244_p10 = scmp.lt.s32.totalorder (!%p216_p9), %s941_s25, 1  ;;  %v258_v0 = vlaneseq (!%p216_p9)  ;;  %v738_v5 = vld [vmem:[%s1133_s5 + $0x4] ss:$8 sm:$0x3] (!%p216_p9)  ;;  %s875_s16 = smov (!%p216_p9), 1   ;;  %v883_v12 = vmov (!%p216_p9), 0  }
   0xe   : > { %219 = sbr.rel (%p216_p9) target bundleno = 590 (0x24e), region = 44  ;;  %s876_s17 = smov (!%p216_p9), 16   ;;  %590 = vmatprep.mubr.bf16.mxu0 (!%p216_p9), %v883_v12  ;;  %600 = vmatprep.mubr.bf16.mxu1 (!%p216_p9), %v883_v12  ;;  %v511_v13 = vld [vmem:[%s1130_s2 + $0x8] sm:$0xff] (!%p216_p9)  ;;  %v510_v14 = vld [vmem:[%s1130_s2] sm:$0xff] (!%p216_p9)  ;;  %v512_v15 = vld [vmem:[%s1130_s2 + $0x10] sm:$0xff] (!%p216_p9)  ;;  %vm551_vm8 = vcmask (!%p216_p9), 1041408  }
   0xf   : > { %v266_v1 = vshrl.u32 (!%p216_p9), %v258_v0, 7  ;;  %s877_s18 = smov (!%p216_p9), 17   ;;  %s878_s19 = smov (!%p216_p9), 15   ;;  %807 = vset.pattern.permute.xlu1 (!%p216_p9), %v883_v12  ;;  %806 = vset.pattern.permute.xlu0 (!%p216_p9), %v883_v12  ;;  %v513_v16 = vld [vmem:[%s1130_s2 + $0x18] sm:$0xff] (!%p216_p9)  ;;  %v994_v17 = vand.u32 (!%p216_p9), 127, %v258_v0  ;;  %vm544_vm9 = vcmask (!%p216_p9), 293888  }
  0x10   : > { %s879_s20 = smov (!%p216_p9), 127   ;;  %s880_s26 = smov (!%p216_p9), 112   ;;  %v737_v18 = vld [vmem:[%s1133_s5 + $0x3] ss:$8 sm:$0x3] (!%p216_p9)  ;;  %vm643_vm10 = vcmask (!%p216_p9), 80896  }
  0x11   : > { %v973_v3 = vsub.s32 (!%p216_p9), 0, %v266_v1  ;;  %v975_v4 = vsub.s32 (!%p216_p9), 1, %v266_v1  ;;  %s881_s28 = smov (!%p216_p9), 113   ;;  %s882_s29 = smov (!%p216_p9), 111   ;;  %vm337_vm0 = vcmp.lt.s32.totalorder (!%p216_p9), %v994_v17, 1  ;;  %vm260_vm1 = vcmp.lt.s32.totalorder (!%p216_p9), %v994_v17, 17 }
  0x12   : > { %v263_v23 = vld [vmem:[%s1133_s5] ss:$8 sm:$0x3] (!%p216_p9)  ;;  %v735_v24 = vld [vmem:[%s1133_s5 + $0x1] ss:$8 sm:$0x3] (!%p216_p9) }
  0x13   : > { %v369_v7 = vrot.slane (!%p216_p9), %v738_v5, %v973_v3  ;;  %v373_v8 = vrot.slane (!%p216_p9), %v738_v5, %v975_v4  ;;  %v346_v21 = vrot.slane (!%p216_p9), %v737_v18, %v973_v3  ;;  %v350_v22 = vrot.slane (!%p216_p9), %v737_v18, %v975_v4  ;;  %v736_v31 = vld [vmem:[%s1133_s5 + $0x2] ss:$8 sm:$0x3] (!%p216_p9)  ;;  %v739_v50 = vld [vmem:[%s1133_s5 + $0x5] ss:$8 sm:$0x3] (!%p216_p9) }
  0x14   : > { %vm283_vm2 = vcmp.lt.s32.totalorder (!%p216_p9), %v994_v17, 16  ;;  %v268_v29 = vrot.slane (!%p216_p9), %v263_v23, %v973_v3  ;;  %v272_v30 = vrot.slane (!%p216_p9), %v263_v23, %v975_v4  ;;  %v292_v34 = vrot.slane (!%p216_p9), %v735_v24, %v973_v3  ;;  %v741_v61 = vld [vmem:[%s1133_s5 + $0x7] ss:$8 sm:$0x3] (!%p216_p9)  ;;  %s242_s15 = sand.u32 (!%p216_p9), 1, %s865_s22  }
  0x15   : > { %s245_s9 = scalar_select %p244_p10, %s941_s25, 1  ;;  %v374_v9 = vcombine.low %v369_v7, %v373_v8  ;;  %v296_v35 = vrot.slane %v735_v24, %v975_v4  ;;  %vm313_vm3 = vcmp.lt.s32.totalorder %v994_v17, 15  ;;  %v322_v40 = vrot.slane %v736_v31, %v973_v3  ;;  %v740_v8 = vld [vmem:[%s1133_s5 + $0x6] ss:$8 sm:$0x3] }
  0x16   : > { %v326_v41 = vrot.slane %v736_v31, %v975_v4  ;;  %vm386_vm4 = vcmp.lt.s32.totalorder %v994_v17, 127  ;;  %v395_v59 = vrot.slane %v739_v50, %v973_v3  ;;  %v399_v60 = vrot.slane %v739_v50, %v975_v4 }
  0x17   : > { %s751_s10 = sshll.u32 %s245_s9, 3  ;;  %vm440_vm5 = vcmp.lt.s32.totalorder %v994_v17, 112  ;;  %v453_v7 = vrot.slane %v741_v61, %v975_v4  ;;  %vm416_vm6 = vcmp.lt.s32.totalorder %v994_v17, 113  ;;  %v425_v18 = vrot.slane %v740_v8, %v973_v3  ;;  %s662_s9 = scalar_lea.sflag [#allocation4], %s242_s15 }
  0x18   : > { %s248_s13 = scalar_lea.vmem %s1128_s0, %s751_s10  ;;  %vm470_vm7 = vcmp.lt.s32.totalorder %v994_v17, 111  ;;  %vm659_vm11 = vcmask 73728  }
  0x19   : > { %v250_v2 = vld [vmem:[%s248_s13] sm:$0xff] }
  0x1a   : > { %333 = vrot.lane.b32.xlu1 %v250_v2, %s875_s16  ;;  %279 = vrot.lane.b32.xlu0 %v250_v2, %s876_s17  ;;  %v252_v6 = vcombine.high %v250_v2, %v250_v2  ;;  %v376_v10 = vmul.f32 %v374_v9, %v250_v2 }
  0x1c   : > { %v378_v11 = vcombine.high %v376_v10, %v376_v10  ;;  %380 = vst [vmem:[#allocation2 + $0x20] sm:$0xf] %v376_v10 }
  0x1e   : > { %254 = vrot.lane.b32.xlu0 %v250_v2, %s877_s18  ;;  %335 = vrot.lane.b32.xlu1 %v252_v6, %s875_s16  ;;  %381 = vst [vmem:[#allocation2 + $0x28] sm:$0xf] %v378_v11 }
  0x22   : > { %256 = vrot.lane.b32.xlu1 %v252_v6, %s877_s18  ;;  %281 = vrot.lane.b32.xlu0 %v252_v6, %s876_s17  ;;  %s748_s18 = sshll.u32 %s941_s25, 4  ;;  %s884_s25 = smov [#allocation3]  }
  0x23   : > { %s815_s11 = sshll.u32 %s884_s25, 4  ;;  %s816_s11 = int_to_ptr.vmem [resolvable:$false] %s815_s11 }
  0x24   : > { %s817_s12 = scalar_lea.vmem %s816_s11, 32 }
  0x26   : > { %311 = vrot.lane.b32.xlu1 %v252_v6, %s878_s19  ;;  %309 = vrot.lane.b32.xlu0 %v250_v2, %s878_s19  ;;  %s243_s19 = scalar_lea.vmem [#allocation3], %s242_s15 }
  0x2a   : > { %384 = vrot.lane.b32.xlu1 %v252_v6, %s879_s20  ;;  %382 = vrot.lane.b32.xlu0 %v250_v2, %s879_s20  ;;  %s674_s20 = sshll.u32 %s243_s19, 4  ;;  %s1088_s20 = int_to_ptr.vmem [resolvable:$true] %s674_s20 }
  0x2b   : > { %s811_s10 = scalar_lea.vmem %s1088_s20, 16  ;;  %p818_p0 = scmp.lt.s32.totalorder %s1088_s20, %s816_s11 }
  0x2c   : > { %p812_p11 = scmp.ne.s32.totalorder %s1088_s20, %s811_s10  ;;  %p819_p1 = scmp.lt.s32.totalorder %s817_s12, %s811_s10 }
  0x2e   : > { %438 = vrot.lane.b32.xlu1 %v252_v6, %s880_s26  ;;  %436 = vrot.lane.b32.xlu0 %v250_v2, %s880_s26  ;;  %p813_p12 = pnand %p812_p11, %p958_p5  ;;  %p820_p2 = por %p819_p1, %p818_p0 }
  0x30   : > { %p814_p13 = pneg %p813_p12 }
  0x32   : > { %414 = vrot.lane.b32.xlu1 %v252_v6, %s881_s28  ;;  %412 = vrot.lane.b32.xlu0 %v250_v2, %s881_s28  ;;  %p821_p3 = pnand %p820_p2, %p814_p13 }
  0x36   : > { %468 = vrot.lane.b32.xlu1 %v252_v6, %s882_s29  ;;  %466 = vrot.lane.b32.xlu0 %v250_v2, %s882_s29  ;;  %v449_v6 = vrot.slane %v741_v61, %v973_v3  ;;  %s1086_s29 = scalar_lea.hbm %s1134_s6, %s748_s18 }
  0x3a   : > { %521 = vperm.xlu1 %807, %v511_v13   ;;  %516 = vperm.xlu0 %806, %v510_v14  }
  0x3e   : > { %526 = vperm.xlu1 %807, %v512_v15   ;;  %531 = vperm.xlu0 %806, %v513_v16  }
  0x8c   : > { %v334_v19 = vpop.permute.xlu1 %333  ;;  %v280_v20 = vpop.permute.xlu0 %279 }
  0x90   : > { %v255_v25 = vpop.permute.xlu0 %254  ;;  %v336_v26 = vpop.permute.xlu1 %335 }
  0x91   : > { %v338_v27 = vsel %vm337_vm0, %v334_v19, %v336_v26  ;;  %v339_v28 = vsel %vm337_vm0, %v336_v26, %v334_v19  ;;  %v429_v19 = vrot.slane %v740_v8, %v975_v4 }
  0x92   : > { %v353_v32 = vmul.f32 %v346_v21, %v339_v28  ;;  %v354_v33 = vmul.f32 %v350_v22, %v338_v27  ;;  %v742_v21 = vld [vmem:[%s1133_s5 + $0x10] ss:$8 sm:$0x3] }
  0x94   : > { %v357_v36 = vrot.slane %v353_v32, 4  ;;  %v358_v37 = vrot.slane %v354_v33, 4  ;;  %v257_v38 = vpop.permute.xlu1 %256  ;;  %v282_v39 = vpop.permute.xlu0 %281  ;;  %v479_v33 = vrot.slane %v742_v21, %v973_v3 }
  0x95   : > { %v261_v42 = vsel %vm260_vm1, %v255_v25, %v257_v38  ;;  %v262_v43 = vsel %vm260_vm1, %v257_v38, %v255_v25  ;;  %v284_v44 = vsel %vm283_vm2, %v280_v20, %v282_v39  ;;  %v285_v45 = vsel %vm283_vm2, %v282_v39, %v280_v20 }
  0x96   : > { %361 = vst [vmem:[#allocation2 + $0x10] sm:$0xf0] %v357_v36  ;;  %362 = vst [vmem:[#allocation2 + $0x18] sm:$0xf0] %v358_v37  ;;  %v275_v46 = vmul.f32 %v268_v29, %v262_v43  ;;  %v276_v47 = vmul.f32 %v272_v30, %v261_v42  ;;  %v299_v48 = vmul.f32 %v292_v34, %v285_v45 }
  0x97   : > { %v300_v49 = vmul.f32 %v296_v35, %v284_v44  ;;  %v483_v36 = vrot.slane %v742_v21, %v975_v4 }
  0x98   : > { %277 = vst [vmem:[#allocation2] sm:$0xf] %v275_v46  ;;  %278 = vst [vmem:[#allocation2 + $0x8] sm:$0xf] %v276_v47  ;;  %v303_v51 = vrot.slane %v299_v48, 4  ;;  %v312_v53 = vpop.permute.xlu1 %311  ;;  %v310_v54 = vpop.permute.xlu0 %309 }
  0x99   : > { %v304_v52 = vrot.slane %v300_v49, 4  ;;  %v314_v55 = vsel %vm313_vm3, %v310_v54, %v312_v53  ;;  %v315_v56 = vsel %vm313_vm3, %v312_v53, %v310_v54 }
  0x9a   : > { %307 = vst [vmem:[#allocation2] sm:$0xf0] %v303_v51  ;;  %v329_v57 = vmul.f32 %v322_v40, %v315_v56  ;;  %v330_v58 = vmul.f32 %v326_v41, %v314_v55  ;;  %v809_v51 = vld [vmem:[%s1129_s1] sm:$0xff]  }
  0x9b   : > { %308 = vst [vmem:[#allocation2 + $0x8] sm:$0xf0] %v304_v52  ;;  %v810_v52 = vld [vmem:[%s1129_s1 + $0x8] sm:$0xff]  }
  0x9c   : > { %331 = vst [vmem:[#allocation2 + $0x10] sm:$0xf] %v329_v57  ;;  %332 = vst [vmem:[#allocation2 + $0x18] sm:$0xf] %v330_v58  ;;  %v385_v62 = vpop.permute.xlu1 %384  ;;  %v383_v63 = vpop.permute.xlu0 %382 }
  0x9d   : > { %v387_v0 = vsel %vm386_vm4, %v383_v63, %v385_v62  ;;  %v388_v1 = vsel %vm386_vm4, %v385_v62, %v383_v63 }
  0x9e   : > { %v402_v2 = vmul.f32 %v395_v59, %v387_v0  ;;  %v403_v5 = vmul.f32 %v399_v60, %v388_v1 }
  0xa0   : > { %v406_v9 = vrot.slane %v402_v2, 4  ;;  %v407_v10 = vrot.slane %v403_v5, 4  ;;  %v439_v11 = vpop.permute.xlu1 %438  ;;  %v437_v12 = vpop.permute.xlu0 %436 }
  0xa1   : > { %v441_v13 = vsel %vm440_vm5, %v437_v12, %v439_v11  ;;  %v442_v14 = vsel %vm440_vm5, %v439_v11, %v437_v12  ;;  %v494_v23 = vld [vmem:[#allocation2] sm:$0xff] }
  0xa2   : > { %410 = vst [vmem:[#allocation2 + $0x20] sm:$0xf0] %v406_v9  ;;  %411 = vst [vmem:[#allocation2 + $0x28] sm:$0xf0] %v407_v10  ;;  %v456_v15 = vmul.f32 %v449_v6, %v441_v13  ;;  %v457_v16 = vmul.f32 %v453_v7, %v442_v14  ;;  %v495_v20 = vld [vmem:[#allocation2 + $0x8] sm:$0xff] }
  0xa3   : > { %v497_v22 = vld [vmem:[#allocation2 + $0x18] sm:$0xff]  ;;  %v496_v24 = vld [vmem:[#allocation2 + $0x10] sm:$0xff] }
  0xa4   : > { %v460_v25 = vrot.slane %v456_v15, 4  ;;  %v461_v26 = vrot.slane %v457_v16, 4  ;;  %v415_v27 = vpop.permute.xlu1 %414  ;;  %v413_v28 = vpop.permute.xlu0 %412  ;;  %v505_v29 = vpack.c.bf16 %v497_v22, %v495_v20  ;;  %v504_v30 = vpack.c.bf16 %v496_v24, %v494_v23 }
  0xa5   : > { %v417_v31 = vsel %vm416_vm6, %v413_v28, %v415_v27  ;;  %v418_v32 = vsel %vm416_vm6, %v415_v27, %v413_v28  ;;  %v636_v27 = vld [vmem:[%s1131_s3 + $0x8] sm:$0xff] }
  0xa6   : > { %464 = vst [vmem:[#allocation2 + $0x30] sm:$0xf0] %v460_v25  ;;  %465 = vst [vmem:[#allocation2 + $0x38] sm:$0xf0] %v461_v26  ;;  %v432_v34 = vmul.f32 %v425_v18, %v417_v31  ;;  %v433_v35 = vmul.f32 %v429_v19, %v418_v32  ;;  %558 = vmatprep.subr.bf16.mxu0 %v505_v29  ;;  %752 = vmatprep.subr.bf16.mxu1 %v505_v29  ;;  %v635_v26 = vld [vmem:[%s1131_s3] sm:$0xff] }
  0xa7   : > { %559 = vmatpush1.bf16.msra.mxu0 %v504_v30  ;;  %755 = vmatpush1.bf16.msra.mxu1 %v504_v30 }
  0xa8   : > { %434 = vst [vmem:[#allocation2 + $0x30] sm:$0xf] %v432_v34  ;;  %435 = vst [vmem:[#allocation2 + $0x38] sm:$0xf] %v433_v35  ;;  %v469_v37 = vpop.permute.xlu1 %468  ;;  %v467_v38 = vpop.permute.xlu0 %466  ;;  %v638_v34 = vld [vmem:[%s1131_s3 + $0x18] sm:$0xff]  ;;  %v637_v35 = vld [vmem:[%s1131_s3 + $0x10] sm:$0xff] }
  0xa9   : > { %v471_v39 = vsel %vm470_vm7, %v467_v38, %v469_v37  ;;  %v472_v40 = vsel %vm470_vm7, %v469_v37, %v467_v38  ;;  %v499_v42 = vld [vmem:[#allocation2 + $0x28] sm:$0xff]  ;;  %v498_v44 = vld [vmem:[#allocation2 + $0x20] sm:$0xff] }
  0xaa   : > { %v486_v41 = vmul.f32 %v479_v33, %v471_v39  ;;  %v487_v3 = vmul.f32 %v483_v36, %v472_v40 }
  0xac   : > { %488 = vst [vmem:[#allocation2 + $0x40] sm:$0xf] %v486_v41  ;;  %489 = vst [vmem:[#allocation2 + $0x48] sm:$0xf] %v487_v3 }
  0xaf   : > { %v501_v43 = vld [vmem:[#allocation2 + $0x38] sm:$0xff]  ;;  %v500_v45 = vld [vmem:[#allocation2 + $0x30] sm:$0xff] }
  0xb0   : > { %v507_v46 = vpack.c.bf16 %v501_v43, %v499_v42  ;;  %v506_v17 = vpack.c.bf16 %v500_v45, %v498_v44 }
  0xb2   : > { %560 = vmatprep.subr.bf16.mxu0 %v507_v46  ;;  %753 = vmatprep.subr.bf16.mxu1 %v507_v46 }
  0xb3   : > { %561 = vmatpush1.bf16.msra.mxu0 %v506_v17  ;;  %756 = vmatpush1.bf16.msra.mxu1 %v506_v17  ;;  %v503_v4 = vld [vmem:[#allocation2 + $0x48] sm:$0xf]  ;;  %v502_v47 = vld [vmem:[#allocation2 + $0x40] sm:$0xf] }
  0xb4   : > { %v509_v48 = vpack.c.bf16 %v503_v4, %v503_v4  ;;  %v508_v49 = vpack.c.bf16 %v502_v47, %v502_v47 }
  0xb6   : > { %745 = vmatprep.subr.msk.bf16.mxu0 %vm551_vm8, %v509_v48  ;;  %754 = vmatprep.subr.msk.bf16.mxu1 %vm551_vm8, %v509_v48  ;;  %v553_v50 = vsel %vm551_vm8, %v508_v49, 0  ;;  %v657_v49 = vld [vmem:[%s1132_s4] sm:$0x1] }
  0xb7   : > { %563 = vmatpush1.bf16.msra.mxu0 %v553_v50  ;;  %757 = vmatpush1.bf16.msra.mxu1 %v553_v50 }
  0xb9   : > { %v522_v53 = vpop.permute.xlu1 %521  ;;  %v517_v54 = vpop.permute.xlu0 %516 }
  0xba   : > { %746 = vmatmul.mubr.msk.bf16.vlgmr.msra.gmra.mrb[0].mxu0 %vm544_vm9, %v809_v51  ;;  %747 = vmatmul.mubr.msk.bf16.vlgmr.msra.gmra.mrb[0].mxu1 %vm544_vm9, %v810_v52 }
  0xbd   : > { %v527_v55 = vpop.permute.xlu1 %526  ;;  %v532_v56 = vpop.permute.xlu0 %531 }
 0x18d   : > { %v592_v57 = vpop.f32.mrb[0].mxu0  ;;  %v602_v58 = vpop.f32.mrb[0].mxu1 }
 0x18e   : > { %v593_v59 = vadd.f32 %v592_v57, %v517_v54  ;;  %v594_v60 = vpop.f32.mrb[1].mxu0  ;;  %v603_v61 = vadd.f32 %v602_v58, %v527_v55  ;;  %v604_v62 = vpop.f32.mrb[1].mxu1 }
 0x18f   : > { %v595_v63 = vadd.f32 %v594_v60, %v517_v54  ;;  %v596_v0 = vpop.f32.mrb[2].mxu0  ;;  %v605_v1 = vadd.f32 %v604_v62, %v527_v55  ;;  %v606_v2 = vpop.f32.mrb[2].mxu1 }
 0x190   : > { %v611_v5 = vmax.f32 %v593_v59, 0.0  ;;  %v597_v6 = vadd.f32 %v596_v0, %v522_v53  ;;  %v615_v7 = vmax.f32 %v603_v61, 0.0  ;;  %v598_v8 = vpop.f32.mrb[3].mxu0  ;;  %v608_v9 = vpop.f32.mrb[3].mxu1  ;;  %v607_v10 = vadd.f32 %v606_v2, %v532_v56 }
 0x191   : > { %v612_v11 = vmax.f32 %v595_v63, 0.0  ;;  %v599_v12 = vadd.f32 %v598_v8, %v522_v53  ;;  %v616_v13 = vmax.f32 %v605_v1, 0.0  ;;  %v609_v14 = vadd.f32 %v608_v9, %v532_v56 }
 0x192   : > { %v613_v15 = vmax.f32 %v597_v6, 0.0  ;;  %v617_v16 = vmax.f32 %v607_v10, 0.0 }
 0x193   : > { %v614_v18 = vmax.f32 %v599_v12, 0.0  ;;  %v618_v19 = vmax.f32 %v609_v14, 0.0  ;;  %v619_v20 = vadd.f32 %v612_v11, %v611_v5  ;;  %v625_v21 = vadd.f32 %v616_v13, %v615_v7 }
 0x195   : > { %620 = vadd.xlane.f32.xlu1 %v619_v20  ;;  %v622_v22 = vadd.f32 %v614_v18, %v613_v15  ;;  %v628_v23 = vadd.f32 %v618_v19, %v617_v16 }
 0x197   : > { %623 = vadd.xlane.f32.xlu0 %v622_v22 }
 0x199   : > { %629 = vadd.xlane.f32.xlu1 %v628_v23 }
 0x19b   : > { %626 = vadd.xlane.f32.xlu0 %v625_v21 }
 0x222   : > { %v621_v24 = vpop.xlane.xlu1 %620 }
 0x223   : > { %v631_v25 = vmul.f32 0.00390625, %v621_v24 }
 0x224   : > { %v624_v28 = vpop.xlane.xlu0 %623 }
 0x225   : > { %v632_v29 = vmul.f32 0.00390625, %v624_v28  ;;  %v639_v31 = vmul.f32 %v635_v26, %v631_v25 }
 0x226   : > { %v630_v30 = vpop.xlane.xlu1 %629 }
 0x227   : > { %v640_v32 = vmul.f32 %v636_v27, %v632_v29  ;;  %v634_v33 = vmul.f32 0.00390625, %v630_v30  ;;  %v644_v39 = vsel %vm643_vm10, %v639_v31, 0.0 }
 0x228   : > { %v627_v36 = vpop.xlane.xlu0 %626 }
 0x229   : > { %v645_v37 = vsel %vm643_vm10, %v640_v32, 0.0  ;;  %v633_v38 = vmul.f32 0.00390625, %v627_v36  ;;  %v642_v40 = vmul.f32 %v638_v34, %v634_v33 }
 0x22a   : > { %v646_v3 = vadd.f32 %v645_v37, %v644_v39 }
 0x22b   : > { %v641_v41 = vmul.f32 %v637_v35, %v633_v38  ;;  %v649_v44 = vsel %vm643_vm10, %v642_v40, 0.0 }
 0x22d   : > { %v647_v42 = vsel %vm643_vm10, %v641_v41, 0.0 }
 0x22e   : > { %v648_v43 = vadd.f32 %v647_v42, %v646_v3 }
 0x230   : > { %v650_v45 = vadd.f32 %v649_v44, %v648_v43 }
 0x232   : > { %v651_v46 = vrot.slane %v650_v45, 4 }
 0x234   : > { %v652_v17 = vadd.f32 %v651_v46, %v650_v45 }
 0x236   : > { %v653_v4 = vrot.slane %v652_v17, 2 }
 0x238   : > { %v654_v47 = vadd.f32 %v653_v4, %v652_v17 }
 0x23a   : > { %v655_v48 = vrot.slane %v654_v47, 1 }
 0x23c   : > { %v656_v50 = vadd.f32 %v655_v48, %v654_v47 }
 0x23e   : > { %v658_v51 = vadd.f32 %v657_v49, %v656_v50 }
 0x240   : > { %660 = vst.msk [vmem:[%s243_s19] sm:$0x1] %vm659_vm11, %v658_v51 }
 0x241   : > { %824 = shalt.err (!%p821_p3)
}
 0x242   : > { %s825_s13 = scalar_lea.hbm %s1086_s29, 16  ;;  %s829_s16 = scalar_lea.hbm %s1134_s6, 32 }
 0x243   : > { %p826_p4 = scmp.ne.s32.totalorder %s1086_s29, %s825_s13  ;;  %p830_p9 = scmp.lt.u32.totalorder %s1086_s29, %s1134_s6 }
 0x244   : > { %p831_p10 = scmp.lt.u32.totalorder %s829_s16, %s825_s13  ;;  %p833_p12 = scmp.lt.u32.totalorder %s825_s13, %s1086_s29 }
 0x245   : > { %p827_p7 = pnand %p826_p4, %p958_p5 }
 0x246   : > { %p832_p11 = por %p831_p10, %p830_p9 }
 0x247   : > { %p828_p8 = pneg %p827_p7 }
 0x248   : > { %p834_p13 = por %p833_p12, %p832_p11 }
 0x24a   : > { %p835_p0 = pnand %p834_p13, %p828_p8 }
 0x24c   : > { %838 = shalt.err (!%p835_p0)
}
 0x24d   : > { %758 = dma.vmem_to_hbm [thread:$0]  (%p958_p5), %s1088_s20, 16, %s1086_s29, %s662_s9  }
 0x24e PF: > { %p764_p1 = scmp.ge.s32.totalorder %s873_s24, 2  ;;  %s686_s19 = sand.u32 1, %s861_s21  }
 0x24f   : > { %s687_s26 = scalar_lea.sflag [#allocation4], %s686_s19 }
 0x250   : > { %p761_p2 = pnand %p764_p1, %p962_p6 }
 0x252   : > { %856 = dma.done.wait (!%p761_p2), %s687_s26, 16  }
 0x253   : > { %858 = vsyncadd (!%p761_p2), %s687_s26, 4294967280  ;;  %p16_p3 = scmp.ge.s32.totalorder %s945_s27, 4   ;;  %s1137_s21 = smov %s865_s22 }
 0x254   : > { %s1138_s22 = smov %s869_s23  ;;  %s1139_s23 = smov %s956_s30 }
 0x255   : > { %s1140_s24 = smov %s945_s27  ;;  %18 = sbr.rel (!%p16_p3) target bundleno = 3 (0x3), region = 87 }
 0x25c   :  { %691 = vsyncpa [#allocation4], 1 }
 0x25d   :  { %693 = vsyncpa [#allocation4 + $0x1], 1 }

</bundles_post_ra>
